<compile_context>
chip_gen: v7x
topology: tpu7x:2x2x1
jax: 0.10.0
libtpu: 0.0.40
codegen_flags: <defaults>
</compile_context>

<pallas_src>
import functools

import numpy as np
import jax
import jax.numpy as jnp
from jax.experimental import pallas as pl
from jax.experimental.pallas import tpu as pltpu


_LANE = 128  # TPU lane width; each kh-chunk of the fused-K LHS uses one full 128-lane row.


def _default_images_per_step():
    """Images per grid step.  Hp=18 rows/image -> ~256 matmul rows on the
    256-deep MXUs (v6e/v7x, 14 images) and ~128 rows on v5e (7 images)."""
    try:
        kind = jax.devices()[0].device_kind.lower()
        if "v5 lite" in kind or "v5e" in kind or "v5lite" in kind:
            return 7
    except Exception:
        pass
    return 14


# ----------------------------------------------------------------------------
# Fused Pallas kernel: conv3x3 + bias + ReLU + global-avg-pool + linear head
# ----------------------------------------------------------------------------
def _fused_convnet_kernel(x_ref, wk_ref, cbias_ref, sel_ref, head_ref, fcb_ref,
                          o_ref, lhs_ref):
    # x_ref:    (1, N_blk*Hp, LANE)  bf16  N_blk zero-padded images stacked on rows;
    #                                      each row = Wp*C_in data lanes, zero-padded to 128
    # wk_ref:   (k*LANE, W*C_out)    bf16  banded conv weights, kh fused along K
    # cbias_ref:(1, W*C_out)         f32   conv bias tiled over w
    # sel_ref:  (N_blk, R_out)       f32   0/1 per-image GAP row selection
    # head_ref: (W*C_out, LANE)      f32   (mean over w -> fc) folded, classes lane-padded
    # fcb_ref:  (1, LANE)            f32
    # o_ref:    (1, N_blk, LANE)     f32
    # lhs_ref:  (R_out, k*LANE)      bf16  scratch: fused-K LHS (kh-shifted row slabs)
    lane = x_ref.shape[2]
    r_out = lhs_ref.shape[0]
    k = lhs_ref.shape[1] // lane

    x2d = x_ref[0]                                   # [N_blk*Hp, LANE] bf16, loaded once
    # Build the fused-K LHS in VMEM: chunk kh = rows shifted down by kh.
    # Destination slices are 128-lane aligned; pad lanes of x2d are true zeros,
    # and the matching weight rows are zero, so no masking/NaN hazards.
    for kh in range(k):                              # static unroll, k == 3
        lhs_ref[:, kh * lane:(kh + 1) * lane] = x2d[kh:kh + r_out, :]

    # One MXU pass for the whole conv of this batch block (K = k*128 instead of 3x K=72).
    acc = jnp.dot(lhs_ref[...], wk_ref[...], preferred_element_type=jnp.float32)

    # Bias + ReLU in f32 (v5e-safe elementwise path); bias broadcast exactly once.
    y = jnp.maximum(acc + cbias_ref[...], 0.0)       # [R_out, W*C_out]

    # Per-image GAP as a constant 0/1 selection matmul: rows whose 3-row conv
    # window straddles two adjacent stacked images are excluded by sel.
    pooled = jnp.dot(sel_ref[...], y, preferred_element_type=jnp.float32)      # [N_blk, W*C_out]
    logits = jnp.dot(pooled, head_ref[...], preferred_element_type=jnp.float32)
    # One lane-dense [N_blk, 128] store per grid step (classes padded to 128).
    o_ref[0, :, :] = (logits + fcb_ref[...]).astype(o_ref.dtype)


@functools.partial(jax.jit, static_argnames=("num_classes",))
def _fused_convnet_forward(x, wk, cbias, sel, head, fcb, *, num_classes):
    """x: NCHW [N, C_in, H, W]; remaining args are prepacked (see SmallConvNet).
    Returns logits [N, num_classes]."""
    N, C_in, H, W = x.shape
    k = wk.shape[0] // _LANE
    wcout = wk.shape[1]                    # W * C_out
    pad = k // 2
    Hp, Wp = H + 2 * pad, W + 2 * pad
    assert Wp * C_in <= _LANE, "padded row (Wp*C_in) must fit in one 128-lane row"
    n_blk = sel.shape[0]
    r_out = n_blk * Hp - (k - 1)
    assert sel.shape[1] == r_out
    num_blocks = -(-N // n_blk)            # cdiv
    n_pad = num_blocks * n_blk

    # ---- per-call input prep: 1x-sized, fuses into one XLA fusion -----------
    x_nhwc = jnp.transpose(x, (0, 2, 3, 1))                            # [N, H, W, C_in]
    xp = jnp.pad(x_nhwc, ((0, n_pad - N), (pad, pad), (pad, pad), (0, 0)))
    xp = xp.reshape(n_pad, Hp, Wp * C_in)
    xp = jnp.pad(xp, ((0, 0), (0, 0), (0, _LANE - Wp * C_in)))         # lane-dense rows
    x_slab = xp.reshape(num_blocks, n_blk * Hp, _LANE).astype(jnp.bfloat16)

    out3d = pl.pallas_call(
        _fused_convnet_kernel,
        out_shape=jax.ShapeDtypeStruct((num_blocks, n_blk, _LANE), jnp.float32),
        grid=(num_blocks,),
        in_specs=[
            pl.BlockSpec((1, n_blk * Hp, _LANE), lambda i: (i, 0, 0)),
            pl.BlockSpec((k * _LANE, wcout), lambda i: (0, 0)),
            pl.BlockSpec((1, wcout), lambda i: (0, 0)),
            pl.BlockSpec((n_blk, r_out), lambda i: (0, 0)),
            pl.BlockSpec((wcout, _LANE), lambda i: (0, 0)),
            pl.BlockSpec((1, _LANE), lambda i: (0, 0)),
        ],
        out_specs=pl.BlockSpec((1, n_blk, _LANE), lambda i: (i, 0, 0)),
        scratch_shapes=[pltpu.VMEM((r_out, k * _LANE), jnp.bfloat16)],
        compiler_params=pltpu.CompilerParams(
            # Only split across TensorCores when there are >= 2 real steps.
            dimension_semantics=(("parallel",) if num_blocks > 1 else ("arbitrary",))),
    )(x_slab, wk, cbias, sel, head, fcb)

    return out3d.reshape(n_pad, _LANE)[:N, :num_classes]


# ----------------------------------------------------------------------------
# The wrapped module (Conv -> ReLU -> GAP -> Linear) and DistModule wrapper
# ----------------------------------------------------------------------------
class SmallConvNet:
    """Deterministically-initialized inner module."""

    def __init__(self, c_in=4, c_out=8, num_classes=10, k=3, seed=0):
        self.c_in, self.c_out, self.k = c_in, c_out, k
        self.num_classes = num_classes
        keys = jax.random.split(jax.random.PRNGKey(seed), 4)
        fan_in_conv = c_in * k * k
        bound_c = 1.0 / float(np.sqrt(fan_in_conv))
        # PyTorch Conv2d weight layout: [C_out, C_in, kH, kW]
        self.conv_w = jax.random.uniform(
            keys[0], (c_out, c_in, k, k), jnp.float32, -bound_c, bound_c)
        self.conv_b = jax.random.uniform(
            keys[1], (c_out,), jnp.float32, -bound_c, bound_c)
        bound_l = 1.0 / float(np.sqrt(c_out))
        # PyTorch Linear weight layout: [num_classes, c_out]
        self.fc_w = jax.random.uniform(
            keys[2], (num_classes, c_out), jnp.float32, -bound_l, bound_l)
        self.fc_b = jax.random.uniform(
            keys[3], (num_classes,), jnp.float32, -bound_l, bound_l)
        # Prepacked kernel operands, hoisted out of the per-call path.
        self._pack_cache = {}   # (H, W)     -> (wk, cbias, head, fcb)
        self._sel_cache = {}    # (n_blk, H) -> sel
        self._images_per_step = _default_images_per_step()

    # -- one-time host-side weight repacking (not on the per-call path) -------
    def _prepack(self, H, W):
        key = (H, W)
        if key not in self._pack_cache:
            k, C_in, C_out, NC = self.k, self.c_in, self.c_out, self.num_classes
            pad = k // 2
            cw = np.asarray(self.conv_w, np.float32)        # [C_out, C_in, k, k]
            cb = np.asarray(self.conv_b, np.float32)
            fw = np.asarray(self.fc_w, np.float32)          # [NC, C_out]
            fb = np.asarray(self.fc_b, np.float32)
            # Banded conv weights, kw folded in, kh fused along K (chunks padded to 128):
            #   wk[kh*LANE + p*C_in + c, w*C_out + co] = cw[co, c, kh, p - w]
            wk = np.zeros((k, _LANE, W * C_out), np.float32)
            for kh in range(k):
                for kw in range(k):
                    for w in range(W):
                        p = w + kw
                        wk[kh, p * C_in:(p + 1) * C_in,
                           w * C_out:(w + 1) * C_out] = cw[:, :, kh, kw].T
            wk = jnp.asarray(wk.reshape(k * _LANE, W * C_out), jnp.bfloat16)
            cbias = jnp.asarray(np.tile(cb, W)[None, :])                 # [1, W*C_out]
            head = np.zeros((W * C_out, _LANE), np.float32)
            head[:, :NC] = np.tile(fw.T, (W, 1)) / float(H * W)          # GAP mean + FC folded
            fcb = np.zeros((1, _LANE), np.float32)
            fcb[0, :NC] = fb
            self._pack_cache[key] = (wk, cbias, jnp.asarray(head), jnp.asarray(fcb))
        return self._pack_cache[key]

    def _sel(self, n_blk, H):
        key = (n_blk, H)
        if key not in self._sel_cache:
            Hp = H + 2 * (self.k // 2)
            sel = np.zeros((n_blk, n_blk * Hp - (self.k - 1)), np.float32)
            for n in range(n_blk):
                sel[n, n * Hp:n * Hp + H] = 1.0
            self._sel_cache[key] = jnp.asarray(sel)
        return self._sel_cache[key]

    def __call__(self, x):
        N, _, H, W = x.shape
        wk, cbias, head, fcb = self._prepack(H, W)
        n_blk = min(N, self._images_per_step)
        sel = self._sel(n_blk, H)
        return _fused_convnet_forward(x, wk, cbias, sel, head, fcb,
                                      num_classes=self.num_classes)


def broadcast_params(model):
    """Broadcast model parameters from rank 0.  Single-device deterministic
    init -> all replicas already identical; no-op here."""
    # TODO(synk): no torch.distributed.broadcast equivalent reproduced here.
    return model


class DistModule:
    """JAX analogue of the PyTorch DistModule wrapper: forward delegates."""

    def __init__(self, module, broadcast=True):
        self.module = module
        if broadcast:
            broadcast_params(self.module)

    def forward(self, *inputs, **kwargs):
        return self.module(*inputs, **kwargs)

    def __call__(self, *inputs, **kwargs):
        return self.forward(*inputs, **kwargs)

    def __getattr__(self, attr):
        # delegate unknown attribute lookups to the wrapped module
        return getattr(self.__dict__["module"], attr)


# ----------------------------------------------------------------------------
def _reference_forward(x, conv_w, conv_b, fc_w, fc_b):
    """Plain-XLA f32 reference for a correctness sanity check."""
    y = jax.lax.conv_general_dilated(
        x, conv_w, window_strides=(1, 1), padding=((1, 1), (1, 1)),
        dimension_numbers=('NCHW', 'OIHW', 'NCHW'))
    y = jnp.maximum(y + conv_b[None, :, None, None], 0.0)
    pooled = jnp.mean(y, axis=(2, 3))
    return pooled @ fc_w.T + fc_b[None, :]


if __name__ == "__main__":
    key = jax.random.PRNGKey(0)
    N, C, H, W = 2, 4, 16, 16
    x = jax.random.normal(key, (N, C, H, W), jnp.float32)   # NCHW, like PyTorch

    inner = SmallConvNet(c_in=C, c_out=8, num_classes=10, seed=0)
    model = DistModule(inner, broadcast=True)

    out = model(x)
    out = jax.block_until_ready(out)
    assert out.shape == (N, 10) and out.dtype == jnp.float32

    ref = _reference_forward(x, inner.conv_w, inner.conv_b, inner.fc_w, inner.fc_b)
    ref = jax.block_until_ready(ref)
    # bf16 MXU path -> loose tolerance vs f32 reference
    assert jnp.allclose(out, ref, atol=5e-2, rtol=5e-2), (
        f"mismatch: max abs err {float(jnp.max(jnp.abs(out - ref)))}")

    print("KERNEL_OK")
</pallas_src>

<mosaic_0001>
module attributes {stable_mosaic.version = 11 : i64} {
  func.func @_fused_convnet_kernel(%arg0: i32, %arg1: memref<1x36x128xbf16, #tpu.memory_space<vmem>>, %arg2: memref<384x128xbf16, #tpu.memory_space<vmem>>, %arg3: memref<1x128xf32, #tpu.memory_space<vmem>>, %arg4: memref<2x34xf32, #tpu.memory_space<vmem>>, %arg5: memref<128x128xf32, #tpu.memory_space<vmem>>, %arg6: memref<1x128xf32, #tpu.memory_space<vmem>>, %arg7: memref<1x2x128xf32, #tpu.memory_space<vmem>>, %arg8: memref<34x384xbf16, #tpu.memory_space<vmem>>) attributes {dimension_semantics = [#tpu.dimension_semantics<arbitrary>], iteration_bounds = array<i64: 1>, scalar_prefetch = 0 : i64, scratch_operands = 1 : i64, tpu.core_type = #tpu.core_type<tc>, window_params = [{transform_indices = @transform_0, window_bounds = array<i64: 1, 36, 128>}, {pipeline_mode = #tpu.pipeline_mode<synchronous>, transform_indices = @transform_1, window_bounds = array<i64: 384, 128>}, {pipeline_mode = #tpu.pipeline_mode<synchronous>, transform_indices = @transform_2, window_bounds = array<i64: 1, 128>}, {pipeline_mode = #tpu.pipeline_mode<synchronous>, transform_indices = @transform_3, window_bounds = array<i64: 2, 34>}, {pipeline_mode = #tpu.pipeline_mode<synchronous>, transform_indices = @transform_4, window_bounds = array<i64: 128, 128>}, {pipeline_mode = #tpu.pipeline_mode<synchronous>, transform_indices = @transform_5, window_bounds = array<i64: 1, 128>}, {transform_indices = @transform_6, window_bounds = array<i64: 1, 2, 128>}]} {
    %c0 = arith.constant 0 : index
    %c0_0 = arith.constant 0 : index
    %c0_1 = arith.constant 0 : index
    %0 = vector.load %arg1[%c0, %c0_0, %c0_1] : memref<1x36x128xbf16, #tpu.memory_space<vmem>>, vector<1x36x128xbf16>
    %1 = vector.shape_cast %0 : vector<1x36x128xbf16> to vector<36x128xbf16>
    %2 = vector.extract_strided_slice %1 {offsets = [0, 0], sizes = [34, 128], strides = [1, 1]} : vector<36x128xbf16> to vector<34x128xbf16>
    %c0_2 = arith.constant 0 : index
    %c0_3 = arith.constant 0 : index
    %3 = vector.load %arg8[%c0_2, %c0_3] : memref<34x384xbf16, #tpu.memory_space<vmem>>, vector<34x128xbf16>
    tpu.vector_store %arg8[%c0_2, %c0_3], %2 {strides = array<i32>} : memref<34x384xbf16, #tpu.memory_space<vmem>>, vector<34x128xbf16>,
    %4 = vector.extract_strided_slice %1 {offsets = [1, 0], sizes = [34, 128], strides = [1, 1]} : vector<36x128xbf16> to vector<34x128xbf16>
    %c0_4 = arith.constant 0 : index
    %c128 = arith.constant 128 : index
    %5 = vector.load %arg8[%c0_4, %c128] : memref<34x384xbf16, #tpu.memory_space<vmem>>, vector<34x128xbf16>
    tpu.vector_store %arg8[%c0_4, %c128], %4 {strides = array<i32>} : memref<34x384xbf16, #tpu.memory_space<vmem>>, vector<34x128xbf16>,
    %6 = vector.extract_strided_slice %1 {offsets = [2, 0], sizes = [34, 128], strides = [1, 1]} : vector<36x128xbf16> to vector<34x128xbf16>
    %c0_5 = arith.constant 0 : index
    %c256 = arith.constant 256 : index
    %7 = vector.load %arg8[%c0_5, %c256] : memref<34x384xbf16, #tpu.memory_space<vmem>>, vector<34x128xbf16>
    tpu.vector_store %arg8[%c0_5, %c256], %6 {strides = array<i32>} : memref<34x384xbf16, #tpu.memory_space<vmem>>, vector<34x128xbf16>,
    %c0_6 = arith.constant 0 : index
    %c0_7 = arith.constant 0 : index
    %8 = vector.load %arg8[%c0_6, %c0_7] : memref<34x384xbf16, #tpu.memory_space<vmem>>, vector<34x384xbf16>
    %c0_8 = arith.constant 0 : index
    %c0_9 = arith.constant 0 : index
    %9 = vector.load %arg2[%c0_8, %c0_9] : memref<384x128xbf16, #tpu.memory_space<vmem>>, vector<384x128xbf16>
    %cst = arith.constant dense<0.000000e+00> : vector<34x128xf32>
    %10 = tpu.matmul %8, %9, %cst {dimension_numbers = #tpu.dot_dimension_numbers<[1], [0], [0], [1], [0, 0, 1, 1], [], []>} : vector<34x384xbf16>, vector<384x128xbf16>, vector<34x128xf32> -> vector<34x128xf32>
    %c0_10 = arith.constant 0 : index
    %c0_11 = arith.constant 0 : index
    %11 = vector.load %arg3[%c0_10, %c0_11] : memref<1x128xf32, #tpu.memory_space<vmem>>, vector<1x128xf32>
    %12 = vector.broadcast %11 : vector<1x128xf32> to vector<34x128xf32>
    %13 = arith.addf %10, %12 : vector<34x128xf32>
    %cst_12 = arith.constant 0.000000e+00 : f32
    %14 = vector.broadcast %cst_12 : f32 to vector<34x128xf32>
    %15 = arith.maximumf %13, %14 : vector<34x128xf32>
    %c0_13 = arith.constant 0 : index
    %c0_14 = arith.constant 0 : index
    %16 = vector.load %arg4[%c0_13, %c0_14] : memref<2x34xf32, #tpu.memory_space<vmem>>, vector<2x34xf32>
    %cst_15 = arith.constant dense<0.000000e+00> : vector<2x128xf32>
    %17 = tpu.matmul %16, %15, %cst_15 {dimension_numbers = #tpu.dot_dimension_numbers<[1], [0], [0], [1], [0, 0, 1, 1], [], []>} : vector<2x34xf32>, vector<34x128xf32>, vector<2x128xf32> -> vector<2x128xf32>
    %c0_16 = arith.constant 0 : index
    %c0_17 = arith.constant 0 : index
    %18 = vector.load %arg5[%c0_16, %c0_17] : memref<128x128xf32, #tpu.memory_space<vmem>>, vector<128x128xf32>
    %cst_18 = arith.constant dense<0.000000e+00> : vector<2x128xf32>
    %19 = tpu.matmul %17, %18, %cst_18 {dimension_numbers = #tpu.dot_dimension_numbers<[1], [0], [0], [1], [0, 0, 1, 1], [], []>} : vector<2x128xf32>, vector<128x128xf32>, vector<2x128xf32> -> vector<2x128xf32>
    %c0_19 = arith.constant 0 : index
    %c0_20 = arith.constant 0 : index
    %20 = vector.load %arg6[%c0_19, %c0_20] : memref<1x128xf32, #tpu.memory_space<vmem>>, vector<1x128xf32>
    %21 = vector.broadcast %20 : vector<1x128xf32> to vector<2x128xf32>
    %22 = arith.addf %19, %21 : vector<2x128xf32>
    %c0_21 = arith.constant 0 : index
    %c0_22 = arith.constant 0 : index
    %c0_23 = arith.constant 0 : index
    %23 = vector.load %arg7[%c0_21, %c0_22, %c0_23] : memref<1x2x128xf32, #tpu.memory_space<vmem>>, vector<1x2x128xf32>
    %24 = vector.shape_cast %23 : vector<1x2x128xf32> to vector<2x128xf32>
    %25 = vector.shape_cast %22 : vector<2x128xf32> to vector<1x2x128xf32>
    tpu.vector_store %arg7[%c0_21, %c0_22, %c0_23], %25 {strides = array<i32>} : memref<1x2x128xf32, #tpu.memory_space<vmem>>, vector<1x2x128xf32>,
    return
  }
  func.func @transform_0(%arg0: i32) -> (i32, i32, i32) {
    %c0_i32 = arith.constant 0 : i32
    %c0_i32_0 = arith.constant 0 : i32
    %c0_i32_1 = arith.constant 0 : i32
    return %arg0, %c0_i32, %c0_i32_0 : i32, i32, i32
  }
  func.func @transform_1(%arg0: i32) -> (i32, i32) {
    %c0_i32 = arith.constant 0 : i32
    %c0_i32_0 = arith.constant 0 : i32
    %c0_i32_1 = arith.constant 0 : i32
    return %c0_i32, %c0_i32_0 : i32, i32
  }
  func.func @transform_2(%arg0: i32) -> (i32, i32) {
    %c0_i32 = arith.constant 0 : i32
    %c0_i32_0 = arith.constant 0 : i32
    %c0_i32_1 = arith.constant 0 : i32
    return %c0_i32, %c0_i32_0 : i32, i32
  }
  func.func @transform_3(%arg0: i32) -> (i32, i32) {
    %c0_i32 = arith.constant 0 : i32
    %c0_i32_0 = arith.constant 0 : i32
    %c0_i32_1 = arith.constant 0 : i32
    return %c0_i32, %c0_i32_0 : i32, i32
  }
  func.func @transform_4(%arg0: i32) -> (i32, i32) {
    %c0_i32 = arith.constant 0 : i32
    %c0_i32_0 = arith.constant 0 : i32
    %c0_i32_1 = arith.constant 0 : i32
    return %c0_i32, %c0_i32_0 : i32, i32
  }
  func.func @transform_5(%arg0: i32) -> (i32, i32) {
    %c0_i32 = arith.constant 0 : i32
    %c0_i32_0 = arith.constant 0 : i32
    %c0_i32_1 = arith.constant 0 : i32
    return %c0_i32, %c0_i32_0 : i32, i32
  }
  func.func @transform_6(%arg0: i32) -> (i32, i32, i32) {
    %c0_i32 = arith.constant 0 : i32
    %c0_i32_0 = arith.constant 0 : i32
    %c0_i32_1 = arith.constant 0 : i32
    return %arg0, %c0_i32, %c0_i32_0 : i32, i32, i32
  }
}

</mosaic_0001>

<bundles_post_ra>
// kernel: _fused_convnet_forward.1
= control target key start
LH: loop header
LB: loop body
LE: loop exit
PB: predicated region body
PF: predicated region fallthrough
CT: control target
= control target key end

     0   :  { %v960_v2 = vmov 0.0   ;;  %vm961_vm0 = vmmov 0   ;;  %vm102_vm1 = vcmask 1042432   ;;  %vm103_vm2 = vcmask 1046532   ;;  %s1212_s0 = inlined_call_operand.vmem [shape: bf16[1,36,128], index: 0, kind: input, shape index: {}]   ;;  %s1213_s1 = inlined_call_operand.vmem [shape: bf16[384,128], index: 1, kind: input, shape index: {}]   ;;  %s1214_s2 = inlined_call_operand.vmem [shape: f32[1,128], index: 2, kind: input, shape index: {}]   ;;  %s1215_s3 = inlined_call_operand.vmem [shape: f32[2,34], index: 3, kind: input, shape index: {}]   ;;  %s1216_s4 = inlined_call_operand.vmem [shape: f32[128,128], index: 4, kind: input, shape index: {}]   ;;  %s1217_s5 = inlined_call_operand.vmem [shape: f32[1,128], index: 5, kind: input, shape index: {}]   ;;  %s1218_s6 = inlined_call_operand.hbm [shape: f32[1,2,128], index: 6, kind: output, shape index: {}]  }
   0x1   :  { %v901_v0 = vld [vmem:[%s1213_s1 + $0x40] sm:$0xff]   ;;  %791 = vmatprep.subr.bf16.mxu1 %v960_v2  ;;  %807 = vmatprep.mubr.msk.bf16.mxu1 %vm961_vm0, %v960_v2  ;;  %v904_v4 = vld [vmem:[%s1213_s1 + $0x48] sm:$0xff]   ;;  %v907_v7 = vld [vmem:[%s1213_s1 + $0x50] sm:$0xff]   ;;  %vm35_vm3 = vsmask.f32 3328 }
   0x2   :  { %v902_v1 = vld [vmem:[%s1213_s1] sm:$0xff]   ;;  %723 = vmatprep.subr.bf16.mxu0 %v901_v0  ;;  %v905_v5 = vld [vmem:[%s1213_s1 + $0x8] sm:$0xff]   ;;  %v908_v8 = vld [vmem:[%s1213_s1 + $0x10] sm:$0xff]   ;;  %vm36_vm4 = vsmask.f32 7440 }
   0x3   :  { %v903_v3 = vld [vmem:[%s1213_s1 + $0x80] sm:$0xff]   ;;  %724 = vmatpush3.bf16.msra.mxu0 %v902_v1  ;;  %v906_v6 = vld [vmem:[%s1213_s1 + $0x88] sm:$0xff]   ;;  %v909_v9 = vld [vmem:[%s1213_s1 + $0x90] sm:$0xff]  }
   0x4   :  { %792 = vmatpush3.bf16.msra.mxu1 %v903_v3  ;;  %725 = vmatprep.subr.bf16.mxu0 %v904_v4  ;;  %v910_v10 = vld [vmem:[%s1213_s1 + $0x58] sm:$0xff]   ;;  %v913_v13 = vld [vmem:[%s1213_s1 + $0x60] sm:$0xff]   ;;  %v916_v16 = vld [vmem:[%s1213_s1 + $0x68] sm:$0xff]  }
   0x5   :  { %793 = vmatprep.subr.bf16.mxu1 %v960_v2  ;;  %v911_v11 = vld [vmem:[%s1213_s1 + $0x18] sm:$0xff]   ;;  %v914_v14 = vld [vmem:[%s1213_s1 + $0x20] sm:$0xff]   ;;  %v917_v17 = vld [vmem:[%s1213_s1 + $0x28] sm:$0xff]  }
   0x6   :  { %v912_v12 = vld [vmem:[%s1213_s1 + $0x98] sm:$0xff]   ;;  %v915_v15 = vld [vmem:[%s1213_s1 + $0xa0] sm:$0xff]   ;;  %v918_v18 = vld [vmem:[%s1213_s1 + $0xa8] sm:$0xff]  }
   0x7   :  { %726 = vmatpush3.bf16.msra.mxu0 %v905_v5  ;;  %v919_v19 = vld [vmem:[%s1213_s1 + $0x70] sm:$0xff]   ;;  %v922_v22 = vld [vmem:[%s1213_s1 + $0x78] sm:$0xff]   ;;  %v25_v23 = vld [vmem:[%s1212_s0] sm:$0xf] }
   0x8   :  { %794 = vmatpush3.bf16.msra.mxu1 %v906_v6  ;;  %727 = vmatprep.subr.bf16.mxu0 %v907_v7  ;;  %v920_v20 = vld [vmem:[%s1213_s1 + $0x30] sm:$0xff]   ;;  %v26_v24 = vld [vmem:[%s1212_s0 + $0x4] sm:$0xf]  ;;  %v27_v25 = vld [vmem:[%s1212_s0 + $0x8] sm:$0xf]  ;;  %v39_v26 = vshrl.u32 %v25_v23, 16 }
   0x9   :  { %795 = vmatprep.subr.bf16.mxu1 %v960_v2  ;;  %v921_v21 = vld [vmem:[%s1213_s1 + $0xb0] sm:$0xff]   ;;  %30 = vst [vmem:[#allocation2] sm:$0xf] %v25_v23  ;;  %31 = vst [vmem:[#allocation2 + $0xc] sm:$0xf] %v26_v24  ;;  %v42_v27 = vshll.u32 %v25_v23, 16 }
   0xa   :  { %32 = vst [vmem:[#allocation2 + $0x18] sm:$0xf] %v27_v25  ;;  %v48_v28 = vshll.u32 %v26_v24, 16  ;;  %v52_v29 = vshrl.u32 %v26_v24, 16  ;;  %v58_v30 = vshll.u32 %v27_v25, 16  ;;  %v62_v31 = vshrl.u32 %v27_v25, 16  ;;  %vm1085_vm5 = vmor %vm102_vm1, %vm103_vm2 }
   0xb   :  { %728 = vmatpush3.bf16.msra.mxu0 %v908_v8  ;;  %v41_v33 = vrot.slane %v39_v26, 4  ;;  %v44_v34 = vrot.slane %v42_v27, 5  ;;  %v685_v35 = vrot.slane %v25_v23, 9  ;;  %v107_v36 = vrot.slane %v26_v24, 5  ;;  %v923_v37 = vld [vmem:[%s1213_s1 + $0x38] sm:$0xff]   ;;  %vm1097_vm6 = vmor %vm35_vm3, %vm36_vm4 }
   0xc   :  { %796 = vmatpush3.bf16.msra.mxu1 %v909_v9  ;;  %729 = vmatprep.subr.bf16.mxu0 %v910_v10  ;;  %v50_v38 = vrot.slane %v48_v28, 5  ;;  %v54_v39 = vrot.slane %v52_v29, 4  ;;  %v60_v40 = vrot.slane %v58_v30, 5  ;;  %v64_v41 = vrot.slane %v62_v31, 4  ;;  %v927_v42 = vld [vmem:[%s1213_s1 + $0xb8] sm:$0xff]  }
   0xd   :  { %797 = vmatprep.subr.bf16.mxu1 %v960_v2  ;;  %v45_v44 = vor.u32 %v44_v34, %v41_v33  ;;  %v108_v45 = vsel %vm1085_vm5, %v685_v35, %v107_v36  ;;  %v109_v46 = vrot.slane %v107_v36, 4  ;;  %v110_v47 = vrot.slane %v27_v25, 5  ;;  %v28_v48 = vld [vmem:[%s1212_s0 + $0xc] sm:$0xf]  ;;  %v29_v49 = vld [vmem:[%s1212_s0 + $0x10] sm:$0x3] }
   0xe   :  { %v55_v50 = vor.u32 %v54_v39, %v50_v38  ;;  %v65_v51 = vor.u32 %v64_v41, %v60_v40  ;;  %124 = vst [vmem:[#allocation2 + $0x8] sm:$0xf] %v108_v45  ;;  %33 = vst [vmem:[#allocation2 + $0x24] sm:$0xf] %v28_v48  ;;  %v68_v52 = vshll.u32 %v28_v48, 16  ;;  %v72_v53 = vshrl.u32 %v28_v48, 16 }
   0xf   :  { %730 = vmatpush3.bf16.msra.mxu0 %v911_v11  ;;  %34 = vst [vmem:[#allocation2 + $0x30] sm:$0x1] %v29_v49 }
  0x10   :  { %798 = vmatpush3.bf16.msra.mxu1 %v912_v12  ;;  %731 = vmatprep.subr.bf16.mxu0 %v913_v13 }
  0x11   :  { %799 = vmatprep.subr.bf16.mxu1 %v960_v2 }
  0x13   :  { %732 = vmatpush3.bf16.msra.mxu0 %v914_v14 }
  0x14   :  { %800 = vmatpush3.bf16.msra.mxu1 %v915_v15  ;;  %733 = vmatprep.subr.bf16.mxu0 %v916_v16 }
  0x15   :  { %801 = vmatprep.subr.bf16.mxu1 %v960_v2 }
  0x17   :  { %734 = vmatpush3.bf16.msra.mxu0 %v917_v17 }
  0x18   :  { %802 = vmatpush3.bf16.msra.mxu1 %v918_v18  ;;  %735 = vmatprep.subr.bf16.mxu0 %v919_v19 }
  0x19   :  { %803 = vmatprep.subr.bf16.mxu1 %v960_v2 }
  0x1b   :  { %736 = vmatpush3.bf16.msra.mxu0 %v920_v20 }
  0x1c   :  { %804 = vmatpush3.bf16.msra.mxu1 %v921_v21  ;;  %737 = vmatprep.subr.bf16.mxu0 %v922_v22 }
  0x1d   :  { %805 = vmatprep.subr.bf16.mxu1 %v960_v2 }
  0x1e   :  { %11 = vsyncpa [#allocation4], 0  ;;  %v46_v54 = vrot.slane %v45_v44, 4  ;;  %v111_v55 = vsel %vm1085_vm5, %v109_v46, %v110_v47  ;;  %v78_v56 = vshll.u32 %v29_v49, 16  ;;  %v112_v57 = vrot.slane %v110_v47, 4  ;;  %v577_v27 = vld [vmem:[%s1216_s4] sm:$0xff] }
  0x1f   :  { %738 = vmatpush3.bf16.msra.mxu0 %v923_v37  ;;  %v56_v58 = vrot.slane %v55_v50, 4  ;;  %v66_v59 = vrot.slane %v65_v51, 4  ;;  %125 = vst [vmem:[#allocation2 + $0x14] sm:$0xf] %v111_v55  ;;  %v70_v60 = vrot.slane %v68_v52, 5  ;;  %v74_v61 = vrot.slane %v72_v53, 4 }
  0x20   :  { %v51_v62 = vsel %vm1097_vm6, %v46_v54, %v50_v38  ;;  %806 = vmatpush3.bf16.msra.mxu1 %v927_v42  ;;  %v80_v63 = vrot.slane %v78_v56, 5  ;;  %v113_v0 = vrot.slane %v28_v48, 5  ;;  %v116_v1 = vrot.slane %v29_v49, 5  ;;  %v924_v17 = vld [vmem:[#allocation2] ss:$12 sps:$4 sm:$0xff]   ;;  %v579_v29 = vld [vmem:[%s1216_s4 + $0x10] sm:$0xff] }
  0x21   :  { %v61_v3 = vsel %vm1097_vm6, %v56_v58, %v60_v40  ;;  %92 = vst [vmem:[#allocation2 + $0x4] sm:$0xf] %v51_v62  ;;  %v71_v4 = vsel %vm1097_vm6, %v66_v59, %v70_v60  ;;  %v75_v5 = vor.u32 %v74_v61, %v70_v60  ;;  %v82_v6 = vshrl.u32 %v29_v49, 16  ;;  %v931_v21 = vld [vmem:[#allocation2 + $0x18] ss:$12 sps:$4 sm:$0xff]   ;;  %v578_v28 = vld [vmem:[%s1216_s4 + $0x8] sm:$0xff] }
  0x22   :  { %93 = vst [vmem:[#allocation2 + $0x10] sm:$0xf] %v61_v3  ;;  %94 = vst [vmem:[#allocation2 + $0x1c] sm:$0xf] %v71_v4  ;;  %v114_v7 = vsel %vm1085_vm5, %v112_v57, %v113_v0  ;;  %v115_v8 = vrot.slane %v113_v0, 4  ;;  %v118_v9 = vrot.slane %v116_v1, 4  ;;  %v874_v30 = vpack.c.bf16 %v578_v28, %v577_v27 }
  0x23   :  { %v76_v10 = vrot.slane %v75_v5, 4  ;;  %126 = vst [vmem:[#allocation2 + $0x20] sm:$0xf] %v114_v7  ;;  %v84_v11 = vrot.slane %v82_v6, 4  ;;  %v962_v26 = vmov 0.0|0.0   ;;  %v580_v31 = vld [vmem:[%s1216_s4 + $0x18] sm:$0xff] }
  0x24   :  { %v117_v12 = vsel %vm1085_vm5, %v115_v8, %v116_v1  ;;  %128 = vst [vmem:[#allocation2 + $0x38] sm:$0x1] %v118_v9  ;;  %867 = vmatprep.subr.bf16.mxu0 %v962_v26  ;;  %873 = vmatprep.subr.bf16.mxu1 %v962_v26  ;;  %v877_v32 = vpack.c.bf16 %v580_v31, %v579_v29  ;;  %v581_v33 = vld [vmem:[%s1216_s4 + $0x20] sm:$0xff]  ;;  %v582_v34 = vld [vmem:[%s1216_s4 + $0x28] sm:$0xff]  ;;  %v583_v36 = vld [vmem:[%s1216_s4 + $0x30] sm:$0xff]  ;;  %vm503_vm7 = vcmask 1041408  }
  0x25   :  { %v81_v13 = vsel %vm1097_vm6, %v76_v10, %v80_v63  ;;  %127 = vst [vmem:[#allocation2 + $0x2c] sm:$0xf] %v117_v12  ;;  %v85_v14 = vor.u32 %v84_v11, %v80_v63  ;;  %v880_v35 = vpack.c.bf16 %v582_v34, %v581_v33  ;;  %v584_v37 = vld [vmem:[%s1216_s4 + $0x38] sm:$0xff]  ;;  %v585_v39 = vld [vmem:[%s1216_s4 + $0x40] sm:$0xff]  ;;  %v586_v40 = vld [vmem:[%s1216_s4 + $0x48] sm:$0xff]  ;;  %vm499_vm8 = vcmask 277504  }
  0x26   :  { %v928_v15 = vld [vmem:[#allocation2 + $0x8] ss:$12 sps:$4 sm:$0xff]   ;;  %95 = vst [vmem:[#allocation2 + $0x28] sm:$0xf] %v81_v13  ;;  %v883_v38 = vpack.c.bf16 %v584_v37, %v583_v36  ;;  %v886_v41 = vpack.c.bf16 %v586_v40, %v585_v39  ;;  %v588_v43 = vld [vmem:[%s1216_s4 + $0x58] sm:$0xff]  ;;  %v589_v45 = vld [vmem:[%s1216_s4 + $0x60] sm:$0xff] }
  0x27   :  { %v86_v16 = vrot.slane %v85_v14, 4  ;;  %808 = vmatmul.mubr.bf16.vlgmr.msra.gmra.mrb[0].mxu1 %v928_v15  ;;  %v587_v42 = vld [vmem:[%s1216_s4 + $0x50] sm:$0xff]  ;;  %v590_v46 = vld [vmem:[%s1216_s4 + $0x68] sm:$0xff]  ;;  %v592_v49 = vld [vmem:[%s1216_s4 + $0x78] sm:$0xff]  ;;  %s963_s15 = smov [#allocation3]  }
  0x28   :  { %811 = vmatprep.mubr.msk.bf16.mxu1 %vm961_vm0, %v960_v2  ;;  %875 = vmatpush3.bf16.msra.mxu1 %v874_v30  ;;  %v889_v44 = vpack.c.bf16 %v588_v43, %v587_v42  ;;  %v892_v47 = vpack.c.bf16 %v590_v46, %v589_v45  ;;  %v591_v48 = vld [vmem:[%s1216_s4 + $0x70] sm:$0xff]  ;;  %v686_v57 = vld [vmem:[%s1214_s2] ss:$0 sm:$0xff]  ;;  %s677_s16 = sshll.u32 %s963_s15, 4  ;;  %s678_s16 = int_to_ptr.vmem [resolvable:$true] %s677_s16 }
  0x29   :  { %v926_v18 = vld [vmem:[#allocation2 + $0x4] ss:$12 sps:$4 sm:$0xff]   ;;  %96 = vst [vmem:[#allocation2 + $0x34] sm:$0x1] %v86_v16  ;;  %876 = vmatprep.subr.bf16.mxu1 %v962_v26  ;;  %v895_v50 = vpack.c.bf16 %v592_v49, %v591_v48  ;;  %s936_s17 = scalar_lea.vmem %s678_s16, 32  ;;  %p941_p1 = scmp.lt.s32.totalorder %s678_s16, %s678_s16 }
  0x2a   :  { %413 = vmatprep.mubr.bf16.mxu0 %v926_v18  ;;  %p937_p0 = scmp.ne.s32.totalorder %s678_s16, %s936_s17  ;;  %p942_p2 = scmp.lt.s32.totalorder %s936_s17, %s936_s17 }
  0x2b   :  { %414 = vmatmul.mubr.bf16.vlgmr.msra.gmra.mrb[0].mxu0 %v924_v17  ;;  %v935_v24 = vld [vmem:[#allocation2 + $0x38] ss:$0 sps:$4 sm:$0x11]  }
  0x2c   :  { %v932_v19 = vld [vmem:[#allocation2 + $0x20] ss:$12 sps:$4 sm:$0xff]   ;;  %878 = vmatpush3.bf16.msra.mxu1 %v877_v32  ;;  %p943_p3 = por %p942_p2, %p941_p1 }
  0x2d   :  { %v929_v20 = vld [vmem:[#allocation2 + $0x1c] ss:$12 sps:$4 sm:$0xff]   ;;  %879 = vmatprep.subr.bf16.mxu1 %v962_v26 }
  0x2e   :  { %421 = vmatprep.mubr.bf16.mxu0 %v929_v20  ;;  %p944_p4 = pnand %p943_p3, %p937_p0 }
  0x2f   :  { %812 = vmatmul.mubr.bf16.gmra.mrb[4].mxu1 %v932_v19 }
  0x30   :  { %v137_v22 = vld [vmem:[#allocation2 + $0x30] sm:$0x11]  ;;  %815 = vmatprep.mubr.msk.bf16.mxu1 %vm961_vm0, %v960_v2  ;;  %881 = vmatpush3.bf16.msra.mxu1 %v880_v35 }
  0x31   :  { %v694_v23 = vcombine.high %v137_v22, %v137_v22  ;;  %v693_v25 = vcombine.low %v137_v22, %v137_v22  ;;  %882 = vmatprep.subr.bf16.mxu1 %v962_v26 }
  0x33   :  { %422 = vmatmul.mubr.bf16.gmra.mrb[4].mxu0 %v931_v21 }
  0x34   :  { %429 = vmatprep.mubr.bf16.mxu0 %v694_v23  ;;  %884 = vmatpush3.bf16.msra.mxu1 %v883_v38  ;;  %v722_v38 = vld [vmem:[%s1217_s5] ss:$0 sm:$0xff] }
  0x35   :  { %885 = vmatprep.subr.bf16.mxu1 %v962_v26 }
  0x37   :  { %816 = vmatmul.mubr.bf16.gmra.mrb[8].mxu1 %v935_v24 }
  0x38   :  { %864 = vmatprep.mubr.msk.f32.mxu1 %vm961_vm0, %v960_v2  ;;  %887 = vmatpush3.bf16.msra.mxu1 %v886_v41 }
  0x39   :  { %888 = vmatprep.subr.bf16.mxu1 %v962_v26 }
  0x3b   :  { %430 = vmatmul.mubr.bf16.gmra.mrb[8].mxu0 %v693_v25 }
  0x3c   :  { %829 = vmatprep.mubr.msk.f32.mxu0 %vm961_vm0, %v960_v2  ;;  %890 = vmatpush3.bf16.msra.mxu1 %v889_v44 }
  0x3d   :  { %891 = vmatprep.subr.bf16.mxu1 %v962_v26 }
  0x40   :  { %893 = vmatpush3.bf16.msra.mxu1 %v892_v47 }
  0x41   :  { %894 = vmatprep.subr.bf16.mxu1 %v962_v26 }
  0x44   :  { %896 = vmatpush3.bf16.msra.mxu1 %v895_v50 }
  0xfa   :  { %v471_v51 = vpop.f32.mrb[0].mxu1 }
  0xfb   :  { %v809_v52 = vpop.f32.mrb[1].mxu1 }
  0xfc   :  { %v474_v53 = vpop.f32.mrb[2].mxu1 }
  0xfd   :  { %v810_v54 = vpop.f32.mrb[3].mxu1 }
  0xfe   :  { %v739_v55 = vpop.f32.mrb[0].mxu0 }
  0xff   :  { %v740_v56 = vpop.f32.mrb[1].mxu0 }
 0x100   :  { %v741_v58 = vadd.f32 %v740_v56, %v739_v55  ;;  %v742_v59 = vpop.f32.mrb[2].mxu0 }
 0x101   :  { %v743_v60 = vpop.f32.mrb[3].mxu0 }
 0x102   :  { %v416_v61 = vadd.f32 %v741_v58, %v686_v57  ;;  %v744_v62 = vadd.f32 %v743_v60, %v742_v59  ;;  %v479_v63 = vpop.f32.mrb[4].mxu1 }
 0x103   :  { %v813_v0 = vpop.f32.mrb[5].mxu1 }
 0x104   :  { %v472_v1 = vadd.f32 %v471_v51, %v416_v61  ;;  %v419_v3 = vadd.f32 %v744_v62, %v686_v57  ;;  %v482_v4 = vpop.f32.mrb[6].mxu1 }
 0x105   :  { %v814_v5 = vpop.f32.mrb[7].mxu1 }
 0x106   :  { %v475_v6 = vadd.f32 %v474_v53, %v419_v3  ;;  %v745_v7 = vpop.f32.mrb[4].mxu0  ;;  %v493_v9 = vmax.f32 %v472_v1, 0.0 }
 0x107   :  { %v746_v8 = vpop.f32.mrb[5].mxu0 }
 0x108   :  { %v494_v10 = vmax.f32 %v475_v6, 0.0  ;;  %v747_v11 = vadd.f32 %v746_v8, %v745_v7  ;;  %v748_v12 = vpop.f32.mrb[6].mxu0 }
 0x109   :  { %v749_v13 = vpop.f32.mrb[7].mxu0 }
 0x10a   :  { %v868_v14 = vpack.c.bf16 %v494_v10, %v493_v9  ;;  %v424_v15 = vadd.f32 %v747_v11, %v686_v57  ;;  %v750_v16 = vadd.f32 %v749_v13, %v748_v12  ;;  %v487_v17 = vpop.f32.mrb[8].mxu1 }
 0x10b   :  { %v817_v18 = vpop.f32.mrb[9].mxu1 }
 0x10c   :  { %v480_v19 = vadd.f32 %v479_v63, %v424_v15  ;;  %v427_v20 = vadd.f32 %v750_v16, %v686_v57  ;;  %869 = vmatpush3.bf16.msra.mxu0 %v868_v14  ;;  %v490_v21 = vpop.f32.mrb[10].mxu1 }
 0x10d   :  { %870 = vmatprep.subr.bf16.mxu0 %v962_v26  ;;  %v818_v22 = vpop.f32.mrb[11].mxu1  ;;  %v498_v26 = vld [vmem:[%s1215_s3] sm:$0x3] }
 0x10e   :  { %v483_v23 = vadd.f32 %v482_v4, %v427_v20  ;;  %v751_v24 = vpop.f32.mrb[8].mxu0  ;;  %v495_v27 = vmax.f32 %v480_v19, 0.0 }
 0x10f   :  { %v752_v25 = vpop.f32.mrb[9].mxu0 }
 0x110   :  { %v496_v28 = vmax.f32 %v483_v23, 0.0  ;;  %v753_v29 = vadd.f32 %v752_v25, %v751_v24  ;;  %v754_v30 = vpop.f32.mrb[10].mxu0 }
 0x111   :  { %v755_v31 = vpop.f32.mrb[11].mxu0 }
 0x112   :  { %v871_v32 = vpack.c.bf16 %v496_v28, %v495_v27  ;;  %v432_v33 = vadd.f32 %v753_v29, %v686_v57 }
 0x114   :  { %v488_v34 = vadd.f32 %v487_v17, %v432_v33  ;;  %872 = vmatpush3.bf16.msra.mxu0 %v871_v32 }
 0x115   :  { %827 = vmatprep.subr.mxu0 %v960_v2 }
 0x116   :  { %v497_v35 = vmax.f32 %v488_v34, 0.0 }
 0x118   :  { %828 = vmatpush3.msk.msra.mxu0 %vm503_vm7, %v497_v35 }
 0x119   :  { %830 = vmatmul.mubr.msk.f32.vlgmr.msra.gmra.mrb[12].mxu0 %vm499_vm8, %v498_v26 }
 0x1ec   :  { %v573_v36 = vpop.f32.mrb[12].mxu0 }
 0x1ed   :  { %v831_v37 = vpop.f32.mrb[13].mxu0  ;;  %865 = vmatmul.mubr.f32.vlgmr.msra.gmra.mrb[12].mxu1 %v573_v36 }
 0x2c0   :  { %v666_v39 = vpop.f32.mrb[12].mxu1 }
 0x2c1   :  { %v667_v2 = vadd.f32 %v722_v38, %v666_v39  ;;  %v866_v40 = vpop.f32.mrb[13].mxu1 }
 0x2c3   :  { %670 = vst [vmem:[#allocation3] sm:$0x3] %v667_v2 }
 0x2c4   :  { %947 = shalt.err (!%p944_p4)
}
 0x2c5   :  { %s948_s19 = scalar_lea.hbm %s1218_s6, 32 }
 0x2c6   :  { %p949_p5 = scmp.ne.s32.totalorder %s1218_s6, %s948_s19  ;;  %p952_p6 = scmp.lt.u32.totalorder %s948_s19, %s1218_s6 }
 0x2c8   :  { %p954_p7 = pnand %p952_p6, %p949_p5 }
 0x2ca   :  { %957 = shalt.err (!%p954_p7)
}
 0x2cb   :  { %680 = dma.vmem_to_hbm [thread:$0]  %s678_s16, 32, %s1218_s6, [#allocation4]  }
 0x2cc   :  { %958 = dma.done.wait [#allocation4], 32  }
 0x2cd   :  { %959 = vsyncadd [#allocation4], 4294967264 }
 0x2ce   :  { %684 = vsyncpa [#allocation4], 1 }

</bundles_post_ra>
